<compile_context>
chip_gen: v7x
topology: tpu7x:2x2x1
jax: 0.10.0
libtpu: 0.0.40
codegen_flags: <defaults>
</compile_context>

<pallas_src>
import jax
import jax.numpy as jnp
from jax.experimental import pallas as pl
from jax.experimental.pallas import tpu as pltpu


def churn_net_kernel(x_ref, w1_ref, b1_ref, w2_ref, b2_ref, w3_ref, b3_ref, o_ref):
    # fc1: (TB, D) @ (D, 64) on the MXU, f32 accumulate.
    x = x_ref[...]                                                        # (TB, D) f32
    h1 = jnp.dot(x, w1_ref[...], preferred_element_type=jnp.float32)      # (TB, 64)
    # Switch to a feature-major layout (batch on lanes): all remaining elementwise
    # work is lane-dense and the head comes out as a lane-dense (1, TB) row.
    h1t = jnp.transpose(h1)                                               # (64, TB)  XLU
    h1t = jnp.maximum(h1t + b1_ref[...], 0.0)                             # bias (64, 1), VPU
    # fc2: (32, 64) @ (64, TB) on the MXU.
    h2t = jnp.dot(w2_ref[...], h1t, preferred_element_type=jnp.float32)   # (32, TB)
    h2t = jnp.maximum(h2t + b2_ref[...], 0.0)                             # bias (32, 1)
    # fc3 (32 -> 1 logit, no activation): VPU multiply + sublane reduce -> (1, TB).
    out = jnp.sum(h2t * w3_ref[...], axis=0, keepdims=True) + b3_ref[...]
    o_ref[...] = out.reshape(o_ref.shape).astype(o_ref.dtype)             # (1, 1, TB)


def churn_net_forward(x, fc1_w, fc1_b, fc2_w, fc2_b, fc3_w, fc3_b, *, max_tb=4096):
    """x: (B, D) f32; weights/biases in PyTorch nn.Linear layout:
       fc1_w (64, D), fc1_b (64,), fc2_w (32, 64), fc2_b (32,), fc3_w (1, 32), fc3_b (1,)."""
    B, D = x.shape
    H1 = fc1_w.shape[0]   # 64
    H2 = fc2_w.shape[0]   # 32

    TB = min(max_tb, ((B + 7) // 8) * 8)        # sublane-aligned batch tile
    num_tiles = pl.cdiv(B, TB)                  # ragged final block is fine (rows independent)

    # One-time tiny glue on the weights only; x is passed through untouched.
    w1 = fc1_w.T.astype(jnp.float32)            # (D, 64)
    b1 = fc1_b.reshape(H1, 1).astype(jnp.float32)
    w2 = fc2_w.astype(jnp.float32)              # (32, 64) -- native (out, in) layout
    b2 = fc2_b.reshape(H2, 1).astype(jnp.float32)
    w3 = fc3_w.reshape(H2, 1).astype(jnp.float32)
    b3 = fc3_b.reshape(1, 1).astype(jnp.float32)

    def resident(a):
        return pl.BlockSpec(a.shape, lambda i, _nd=a.ndim: (0,) * _nd)

    out = pl.pallas_call(
        churn_net_kernel,
        out_shape=jax.ShapeDtypeStruct((num_tiles, 1, TB), jnp.float32),
        grid=(num_tiles,),
        in_specs=[
            pl.BlockSpec((TB, D), lambda i: (i, 0)),     # x streamed; last dim = full D
            resident(w1), resident(b1),                  # weights/biases: VMEM-resident
            resident(w2), resident(b2),
            resident(w3), resident(b3),
        ],
        out_specs=pl.BlockSpec((1, 1, TB), lambda i: (i, 0, 0)),   # lane-dense output row
        compiler_params=pltpu.CompilerParams(
            dimension_semantics=("parallel",),           # megacore on v7x
            vmem_limit_bytes=32 * 1024 * 1024),
    )(x.astype(jnp.float32), w1, b1, w2, b2, w3, b3)

    # Ragged final tile rows are unspecified; slice to the true batch.
    return out.reshape(-1)[:B].reshape(B, 1)


def init_params(key, input_dim):
    """Deterministic synthetic init matching nn.Linear shapes (out, in)."""
    ks = jax.random.split(key, 6)

    def linear(kw, kb, fan_in, fan_out):
        bound = 1.0 / jnp.sqrt(fan_in)
        w = jax.random.uniform(kw, (fan_out, fan_in), jnp.float32, -bound, bound)
        b = jax.random.uniform(kb, (fan_out,), jnp.float32, -bound, bound)
        return w, b

    w1, b1 = linear(ks[0], ks[1], input_dim, 64)
    w2, b2 = linear(ks[2], ks[3], 64, 32)
    w3, b3 = linear(ks[4], ks[5], 32, 1)
    return w1, b1, w2, b2, w3, b3


if __name__ == "__main__":
    key = jax.random.PRNGKey(0)
    k_x, k_x2, k_p = jax.random.split(key, 3)

    # input_dim = width of the preprocessed feature vector (one-hot geography/gender
    # + numeric columns). TODO(synk): the sklearn `preprocessor.transform` / Streamlit
    # input plumbing has no Pallas equivalent; only the ChurnNet forward is kernelized.
    batch, input_dim = 8, 13
    fc1_w, fc1_b, fc2_w, fc2_b, fc3_w, fc3_b = init_params(k_p, input_dim)

    def ref_forward(xv):
        hi = jax.lax.Precision.HIGHEST
        h1 = jnp.maximum(jnp.dot(xv, fc1_w.T, precision=hi) + fc1_b[None, :], 0.0)
        h2 = jnp.maximum(jnp.dot(h1, fc2_w.T, precision=hi) + fc2_b[None, :], 0.0)
        return jnp.dot(h2, fc3_w.T, precision=hi) + fc3_b[None, :]

    # Single-tile case.
    x = jax.random.normal(k_x, (batch, input_dim), jnp.float32)
    out = churn_net_forward(x, fc1_w, fc1_b, fc2_w, fc2_b, fc3_w, fc3_b)
    jax.block_until_ready(out)
    ref = ref_forward(x)
    assert out.shape == (batch, 1)
    assert jnp.allclose(out, ref, atol=2e-3, rtol=2e-3), (
        f"max abs err {jnp.max(jnp.abs(out - ref))}")

    # Multi-tile + ragged final block (exercises cdiv grid and lane-dense output path).
    batch2 = 300
    x2 = jax.random.normal(k_x2, (batch2, input_dim), jnp.float32)
    out2 = churn_net_forward(x2, fc1_w, fc1_b, fc2_w, fc2_b, fc3_w, fc3_b, max_tb=128)
    jax.block_until_ready(out2)
    ref2 = ref_forward(x2)
    assert out2.shape == (batch2, 1)
    assert jnp.allclose(out2, ref2, atol=2e-3, rtol=2e-3), (
        f"max abs err {jnp.max(jnp.abs(out2 - ref2))}")

    print("KERNEL_OK")
</pallas_src>

<mosaic_0001>
module attributes {stable_mosaic.version = 11 : i64} {
  func.func @churn_net_kernel(%arg0: i32, %arg1: memref<8x13xf32, #tpu.memory_space<vmem>>, %arg2: memref<13x64xf32, #tpu.memory_space<vmem>>, %arg3: memref<64x1xf32, #tpu.memory_space<vmem>>, %arg4: memref<32x64xf32, #tpu.memory_space<vmem>>, %arg5: memref<32x1xf32, #tpu.memory_space<vmem>>, %arg6: memref<32x1xf32, #tpu.memory_space<vmem>>, %arg7: memref<1x1xf32, #tpu.memory_space<vmem>>, %arg8: memref<1x1x8xf32, #tpu.memory_space<vmem>>) attributes {dimension_semantics = [#tpu.dimension_semantics<parallel>], iteration_bounds = array<i64: 1>, scalar_prefetch = 0 : i64, scratch_operands = 0 : i64, tpu.core_type = #tpu.core_type<tc>, window_params = [{transform_indices = @transform_0, window_bounds = array<i64: 8, 13>}, {pipeline_mode = #tpu.pipeline_mode<synchronous>, transform_indices = @transform_1, window_bounds = array<i64: 13, 64>}, {pipeline_mode = #tpu.pipeline_mode<synchronous>, transform_indices = @transform_2, window_bounds = array<i64: 64, 1>}, {pipeline_mode = #tpu.pipeline_mode<synchronous>, transform_indices = @transform_3, window_bounds = array<i64: 32, 64>}, {pipeline_mode = #tpu.pipeline_mode<synchronous>, transform_indices = @transform_4, window_bounds = array<i64: 32, 1>}, {pipeline_mode = #tpu.pipeline_mode<synchronous>, transform_indices = @transform_5, window_bounds = array<i64: 32, 1>}, {pipeline_mode = #tpu.pipeline_mode<synchronous>, transform_indices = @transform_6, window_bounds = array<i64: 1, 1>}, {transform_indices = @transform_7, window_bounds = array<i64: 1, 1, 8>}]} {
    %c0 = arith.constant 0 : index
    %c0_0 = arith.constant 0 : index
    %0 = vector.load %arg1[%c0, %c0_0] : memref<8x13xf32, #tpu.memory_space<vmem>>, vector<8x13xf32>
    %c0_1 = arith.constant 0 : index
    %c0_2 = arith.constant 0 : index
    %1 = vector.load %arg2[%c0_1, %c0_2] : memref<13x64xf32, #tpu.memory_space<vmem>>, vector<13x64xf32>
    %cst = arith.constant dense<0.000000e+00> : vector<8x64xf32>
    %2 = tpu.matmul %0, %1, %cst {dimension_numbers = #tpu.dot_dimension_numbers<[1], [0], [0], [1], [0, 0, 1, 1], [], []>} : vector<8x13xf32>, vector<13x64xf32>, vector<8x64xf32> -> vector<8x64xf32>
    %3 = tpu.transpose %2, [1, 0] : vector<8x64xf32> -> vector<64x8xf32>
    %c0_3 = arith.constant 0 : index
    %c0_4 = arith.constant 0 : index
    %4 = vector.load %arg3[%c0_3, %c0_4] : memref<64x1xf32, #tpu.memory_space<vmem>>, vector<64x1xf32>
    %5 = vector.broadcast %4 : vector<64x1xf32> to vector<64x8xf32>
    %6 = arith.addf %3, %5 : vector<64x8xf32>
    %cst_5 = arith.constant 0.000000e+00 : f32
    %7 = vector.broadcast %cst_5 : f32 to vector<64x8xf32>
    %8 = arith.maximumf %6, %7 : vector<64x8xf32>
    %c0_6 = arith.constant 0 : index
    %c0_7 = arith.constant 0 : index
    %9 = vector.load %arg4[%c0_6, %c0_7] : memref<32x64xf32, #tpu.memory_space<vmem>>, vector<32x64xf32>
    %cst_8 = arith.constant dense<0.000000e+00> : vector<32x8xf32>
    %10 = tpu.matmul %9, %8, %cst_8 {dimension_numbers = #tpu.dot_dimension_numbers<[1], [0], [0], [1], [0, 0, 1, 1], [], []>} : vector<32x64xf32>, vector<64x8xf32>, vector<32x8xf32> -> vector<32x8xf32>
    %c0_9 = arith.constant 0 : index
    %c0_10 = arith.constant 0 : index
    %11 = vector.load %arg5[%c0_9, %c0_10] : memref<32x1xf32, #tpu.memory_space<vmem>>, vector<32x1xf32>
    %12 = vector.broadcast %11 : vector<32x1xf32> to vector<32x8xf32>
    %13 = arith.addf %10, %12 : vector<32x8xf32>
    %cst_11 = arith.constant 0.000000e+00 : f32
    %14 = vector.broadcast %cst_11 : f32 to vector<32x8xf32>
    %15 = arith.maximumf %13, %14 : vector<32x8xf32>
    %c0_12 = arith.constant 0 : index
    %c0_13 = arith.constant 0 : index
    %16 = vector.load %arg6[%c0_12, %c0_13] : memref<32x1xf32, #tpu.memory_space<vmem>>, vector<32x1xf32>
    %17 = vector.broadcast %16 : vector<32x1xf32> to vector<32x8xf32>
    %18 = arith.mulf %15, %17 : vector<32x8xf32>
    %cst_14 = arith.constant dense<0.000000e+00> : vector<8xf32>
    %19 = vector.multi_reduction <add>, %18, %cst_14 [0] : vector<32x8xf32> to vector<8xf32>
    %20 = vector.shape_cast %19 : vector<8xf32> to vector<1x8xf32>
    %c0_15 = arith.constant 0 : index
    %c0_16 = arith.constant 0 : index
    %21 = vector.load %arg7[%c0_15, %c0_16] : memref<1x1xf32, #tpu.memory_space<vmem>>, vector<1x1xf32>
    %22 = vector.broadcast %21 : vector<1x1xf32> to vector<1x8xf32>
    %23 = arith.addf %20, %22 : vector<1x8xf32>
    %24 = vector.shape_cast %23 : vector<1x8xf32> to vector<1x1x8xf32>
    %c0_17 = arith.constant 0 : index
    %c0_18 = arith.constant 0 : index
    %c0_19 = arith.constant 0 : index
    %25 = vector.load %arg8[%c0_17, %c0_18, %c0_19] : memref<1x1x8xf32, #tpu.memory_space<vmem>>, vector<1x1x8xf32>
    tpu.vector_store %arg8[%c0_17, %c0_18, %c0_19], %24 {strides = array<i32>} : memref<1x1x8xf32, #tpu.memory_space<vmem>>, vector<1x1x8xf32>,
    return
  }
  func.func @transform_0(%arg0: i32) -> (i32, i32) {
    %c0_i32 = arith.constant 0 : i32
    %c0_i32_0 = arith.constant 0 : i32
    return %arg0, %c0_i32 : i32, i32
  }
  func.func @transform_1(%arg0: i32) -> (i32, i32) {
    %c0_i32 = arith.constant 0 : i32
    %c0_i32_0 = arith.constant 0 : i32
    %c0_i32_1 = arith.constant 0 : i32
    return %c0_i32, %c0_i32_0 : i32, i32
  }
  func.func @transform_2(%arg0: i32) -> (i32, i32) {
    %c0_i32 = arith.constant 0 : i32
    %c0_i32_0 = arith.constant 0 : i32
    %c0_i32_1 = arith.constant 0 : i32
    return %c0_i32, %c0_i32_0 : i32, i32
  }
  func.func @transform_3(%arg0: i32) -> (i32, i32) {
    %c0_i32 = arith.constant 0 : i32
    %c0_i32_0 = arith.constant 0 : i32
    %c0_i32_1 = arith.constant 0 : i32
    return %c0_i32, %c0_i32_0 : i32, i32
  }
  func.func @transform_4(%arg0: i32) -> (i32, i32) {
    %c0_i32 = arith.constant 0 : i32
    %c0_i32_0 = arith.constant 0 : i32
    %c0_i32_1 = arith.constant 0 : i32
    return %c0_i32, %c0_i32_0 : i32, i32
  }
  func.func @transform_5(%arg0: i32) -> (i32, i32) {
    %c0_i32 = arith.constant 0 : i32
    %c0_i32_0 = arith.constant 0 : i32
    %c0_i32_1 = arith.constant 0 : i32
    return %c0_i32, %c0_i32_0 : i32, i32
  }
  func.func @transform_6(%arg0: i32) -> (i32, i32) {
    %c0_i32 = arith.constant 0 : i32
    %c0_i32_0 = arith.constant 0 : i32
    %c0_i32_1 = arith.constant 0 : i32
    return %c0_i32, %c0_i32_0 : i32, i32
  }
  func.func @transform_7(%arg0: i32) -> (i32, i32, i32) {
    %c0_i32 = arith.constant 0 : i32
    %c0_i32_0 = arith.constant 0 : i32
    %c0_i32_1 = arith.constant 0 : i32
    return %arg0, %c0_i32, %c0_i32_0 : i32, i32, i32
  }
}

</mosaic_0001>

<bundles_post_ra>
// kernel: tpu_custom_call.1
= control target key start
LH: loop header
LB: loop body
LE: loop exit
PB: predicated region body
PF: predicated region fallthrough
CT: control target
= control target key end

     0   :  { %s645_s0 = inlined_call_operand.vmem [shape: f32[8,13], index: 0, kind: input, shape index: {}]   ;;  %s646_s1 = inlined_call_operand.vmem [shape: f32[13,64], index: 1, kind: input, shape index: {}]   ;;  %s647_s2 = inlined_call_operand.vmem [shape: f32[64,1], index: 2, kind: input, shape index: {}]   ;;  %s648_s3 = inlined_call_operand.vmem [shape: f32[32,64], index: 3, kind: input, shape index: {}]   ;;  %s649_s4 = inlined_call_operand.vmem [shape: f32[32,1], index: 4, kind: input, shape index: {}]   ;;  %s650_s5 = inlined_call_operand.vmem [shape: f32[32,1], index: 5, kind: input, shape index: {}]   ;;  %s651_s6 = inlined_call_operand.<no memory space> [shape: f32[1,1], index: 6, kind: input, shape index: {}]   ;;  %s652_s7 = inlined_call_operand.hbm [shape: f32[1,1,8], index: 7, kind: output, shape index: {}]  }
   0x1   :  { %v12_v0 = vstv %s651_s6 }
   0x2   :  { %13 = vst [vmem:[#allocation2] sm:$0x1] %v12_v0 }
   0x3   :  { %v30_v1 = vld [vmem:[%s646_s1] sm:$0xff]  ;;  %v31_v2 = vld [vmem:[%s646_s1 + $0x8] sm:$0x1f]  ;;  %vm36_vm0 = vcmask 1044480   ;;  %v507_v3 = vmov 0.0|0.0   ;;  %vm508_vm1 = vmmov 1  }
   0x4   :  { %455 = vmatprep.subr.bf16.mxu0 %v507_v3  ;;  %v456_v4 = vpack.c.bf16 %v31_v2, %v30_v1  ;;  %vm457_vm2 = vmpackc.low %vm36_vm0, %vm508_vm1  ;;  %v142_v5 = vld [vmem:[%s647_s2] sm:$0xff]  ;;  %vm509_vm3 = vmmov 0   ;;  %v510_v6 = vmov 0.0   ;;  %vm32_vm4 = vcmask 105472   ;;  %v144_v9 = vld [vmem:[%s647_s2 + $0x10] sm:$0xff] }
   0x5   :  { %430 = vmatprep.mubr.msk.f32.mxu0 %vm509_vm3, %v510_v6  ;;  %v29_v7 = vld [vmem:[%s645_s0] sm:$0xff]  ;;  %v511_v8 = vmov 0   ;;  %v143_v10 = vld [vmem:[%s647_s2 + $0x8] sm:$0xff] }
   0x6   :  { %458 = vmatpush3.bf16.msk.msra.mxu0 %vm457_vm2, %v456_v4  ;;  %481 = vset.pattern.permute.xlu0 %v511_v8 }
   0x7   :  { %152 = vperm.xlu0 %481, %v142_v5   ;;  %482 = vset.pattern.permute.xlu1 %v511_v8 }
   0x8   :  { %162 = vperm.xlu1 %482, %v144_v9  }
   0x9   :  { %14 = vsyncpa [#allocation4], 0  ;;  %431 = vmatmul.mubr.msk.f32.vlgmr.msra.gmra.mrb[0].mxu0 %vm32_vm4, %v29_v7  ;;  %v145_v11 = vld [vmem:[%s647_s2 + $0x18] sm:$0xff]  ;;  %v146_v12 = vld [vmem:[%s647_s2 + $0x20] sm:$0xff]  ;;  %vm234_vm5 = vcmask 523264   ;;  %vm364_vm6 = vcmask 64512  }
   0xa   :  { %v147_v13 = vld [vmem:[%s647_s2 + $0x28] sm:$0xff]  ;;  %v148_v14 = vld [vmem:[%s647_s2 + $0x30] sm:$0xff]  ;;  %v149_v15 = vld [vmem:[%s647_s2 + $0x38] sm:$0xff]  ;;  %vm389_vm7 = vcmask 57344  }
   0xb   :  { %157 = vperm.xlu0 %481, %v143_v10   ;;  %v210_v16 = vld [vmem:[%s649_s4] sm:$0xff]  ;;  %v211_v17 = vld [vmem:[%s649_s4 + $0x8] sm:$0xff]  ;;  %v212_v18 = vld [vmem:[%s649_s4 + $0x10] sm:$0xff] }
   0xc   :  { %167 = vperm.xlu1 %482, %v145_v11   ;;  %v213_v19 = vld [vmem:[%s649_s4 + $0x18] sm:$0xff]  ;;  %v336_v20 = vld [vmem:[%s650_s5] sm:$0xff]  ;;  %v337_v21 = vld [vmem:[%s650_s5 + $0x8] sm:$0xff] }
   0xd   :  { %v338_v22 = vld [vmem:[%s650_s5 + $0x10] sm:$0xff]  ;;  %v339_v23 = vld [vmem:[%s650_s5 + $0x18] sm:$0xff]  ;;  %v206_v26 = vld [vmem:[%s648_s3] sm:$0xff] }
   0xe   :  { %449 = vmatprep.mubr.msk.f32.mxu1 %vm234_vm5, %v206_v26  ;;  %v378_v27 = vld [vmem:[#allocation2] sm:$0x1]  ;;  %v207_v0 = vld [vmem:[%s648_s3 + $0x8] sm:$0xff]  ;;  %v208_v1 = vld [vmem:[%s648_s3 + $0x10] sm:$0xff] }
   0xf   :  { %172 = vperm.xlu0 %481, %v146_v12   ;;  %v209_v2 = vld [vmem:[%s648_s3 + $0x18] sm:$0xff]  ;;  %s512_s3 = smov [#allocation3]  }
  0x10   :  { %177 = vperm.xlu1 %482, %v147_v13   ;;  %s397_s17 = sshll.u32 %s512_s3, 4  ;;  %s398_s17 = int_to_ptr.vmem [resolvable:$true] %s397_s17 }
  0x11   :  { %s483_s18 = scalar_lea.vmem %s398_s17, 16  ;;  %s487_s19 = scalar_lea.vmem %s398_s17, 32 }
  0x12   :  { %p484_p0 = scmp.ne.s32.totalorder %s398_s17, %s483_s18  ;;  %p488_p1 = scmp.lt.s32.totalorder %s398_s17, %s398_s17 }
  0x13   :  { %182 = vperm.xlu0 %481, %v148_v14   ;;  %p489_p2 = scmp.lt.s32.totalorder %s487_s19, %s483_s18 }
  0x14   :  { %187 = vperm.xlu1 %482, %v149_v15  }
  0x15   :  { %p490_p3 = por %p489_p2, %p488_p1 }
  0x17   :  { %p491_p4 = pnand %p490_p3, %p484_p0 }
  0x18   :  { %216 = vperm.xlu1 %482, %v210_v16  }
  0x1c   :  { %221 = vperm.xlu1 %482, %v211_v17  }
  0x20   :  { %226 = vperm.xlu1 %482, %v212_v18  }
  0x24   :  { %231 = vperm.xlu1 %482, %v213_v19  }
  0x28   :  { %342 = vperm.xlu1 %482, %v336_v20  }
  0x2c   :  { %347 = vperm.xlu1 %482, %v337_v21  }
  0x30   :  { %352 = vperm.xlu1 %482, %v338_v22  }
  0x34   :  { %357 = vperm.xlu1 %482, %v339_v23  }
  0x86   :  { %v153_v28 = vpop.permute.xlu0 %152 }
  0x87   :  { %v163_v36 = vpop.permute.xlu1 %162 }
  0x8a   :  { %v158_v29 = vpop.permute.xlu0 %157 }
  0x8b   :  { %v168_v42 = vpop.permute.xlu1 %167 }
  0x8e   :  { %v173_v30 = vpop.permute.xlu0 %172 }
  0x8f   :  { %v178_v50 = vpop.permute.xlu1 %177 }
  0x92   :  { %v183_v31 = vpop.permute.xlu0 %182 }
  0x93   :  { %v188_v58 = vpop.permute.xlu1 %187 }
  0x97   :  { %v217_v3 = vpop.permute.xlu1 %216 }
  0x9b   :  { %v222_v4 = vpop.permute.xlu1 %221 }
  0x9f   :  { %v227_v5 = vpop.permute.xlu1 %226 }
  0xa3   :  { %v232_v6 = vpop.permute.xlu1 %231 }
  0xa7   :  { %v343_v7 = vpop.permute.xlu1 %342 }
  0xab   :  { %v348_v8 = vpop.permute.xlu1 %347 }
  0xaf   :  { %v353_v13 = vpop.permute.xlu1 %352 }
  0xb3   :  { %v358_v26 = vpop.permute.xlu1 %357 }
  0xdc   :  { %v106_v24 = vpop.f32.mrb[0].mxu0 }
  0xdd   :  { %110 = vxpose.xlu0.b32.start.end [1/1] (short) (narrow) %v106_v24, 64  ;;  %v432_v25 = vpop.f32.mrb[1].mxu0 }
 0x122   :  { %381 = vperm.xlu0 %481, %v378_v27  }
 0x15d   :  { %v126_v32 = vpop.trf.xlu0 }
 0x15e   :  { %v190_v33 = vadd.f32 %v153_v28, %v126_v32 }
 0x160   :  { %v198_v37 = vmax.f32 %v190_v33, 0.0  ;;  %v384_v33 = vlaneseq }
 0x161   :  { %v127_v34 = vpop.trf.xlu0 }
 0x162   :  { %v191_v35 = vadd.f32 %v158_v29, %v127_v34 }
 0x164   :  { %v199_v38 = vmax.f32 %v191_v35, 0.0 }
 0x165   :  { %v128_v39 = vpop.trf.xlu0 }
 0x166   :  { %v459_v40 = vpack.c.bf16 %v199_v38, %v198_v37  ;;  %v192_v41 = vadd.f32 %v163_v36, %v128_v39  ;;  %v385_v36 = vshrl.u32 %v384_v33, 7 }
 0x168   :  { %460 = vmatprep.subr.bf16.mxu1 %v459_v40  ;;  %v200_v45 = vmax.f32 %v192_v41, 0.0  ;;  %v386_v39 = vsub.s32 0, %v385_v36 }
 0x169   :  { %462 = vmatpush3.bf16.msra.mxu1 %v459_v40  ;;  %v129_v43 = vpop.trf.xlu0 }
 0x16a   :  { %v193_v44 = vadd.f32 %v168_v42, %v129_v43 }
 0x16c   :  { %v201_v46 = vmax.f32 %v193_v44, 0.0 }
 0x16d   :  { %v130_v47 = vpop.trf.xlu0 }
 0x16e   :  { %v463_v48 = vpack.c.bf16 %v201_v46, %v200_v45  ;;  %v194_v49 = vadd.f32 %v173_v30, %v130_v47 }
 0x170   :  { %464 = vmatprep.subr.bf16.mxu1 %v463_v48  ;;  %v202_v53 = vmax.f32 %v194_v49, 0.0 }
 0x171   :  { %466 = vmatpush3.bf16.msra.mxu1 %v463_v48  ;;  %v131_v51 = vpop.trf.xlu0 }
 0x172   :  { %v195_v52 = vadd.f32 %v178_v50, %v131_v51 }
 0x174   :  { %v203_v54 = vmax.f32 %v195_v52, 0.0 }
 0x175   :  { %v132_v55 = vpop.trf.xlu0 }
 0x176   :  { %v467_v56 = vpack.c.bf16 %v203_v54, %v202_v53  ;;  %v196_v57 = vadd.f32 %v183_v31, %v132_v55 }
 0x178   :  { %468 = vmatprep.subr.bf16.mxu1 %v467_v56  ;;  %v204_v61 = vmax.f32 %v196_v57, 0.0 }
 0x179   :  { %470 = vmatpush3.bf16.msra.mxu1 %v467_v56  ;;  %v133_v59 = vpop.trf.xlu0 }
 0x17a   :  { %v197_v60 = vadd.f32 %v188_v58, %v133_v59 }
 0x17c   :  { %v205_v62 = vmax.f32 %v197_v60, 0.0 }
 0x17e   :  { %v471_v63 = vpack.c.bf16 %v205_v62, %v204_v61 }
 0x180   :  { %472 = vmatprep.subr.bf16.mxu1 %v471_v63 }
 0x181   :  { %474 = vmatpush3.bf16.msra.mxu1 %v471_v63 }
 0x184   :  { %450 = vmatmul.mubr.msk.f32.vlgmr.msra.gmra.mrb[0].mxu1 %vm234_vm5, %v207_v0 }
 0x185   :  { %452 = vmatprep.mubr.msk.f32.mxu1 %vm234_vm5, %v208_v1 }
 0x188   :  { %453 = vmatmul.mubr.msk.f32.gmra.mrb[2].mxu1 %vm234_vm5, %v209_v2 }
 0x1a1   :  { %v382_v41 = vpop.permute.xlu0 %381 }
 0x1a2   :  { %v387_v43 = vrot.slane %v382_v41, %v386_v39 }
 0x257   :  { %v451_v9 = vpop.f32.mrb[0].mxu1 }
 0x258   :  { %v319_v10 = vadd.f32 %v451_v9, %v222_v4  ;;  %v313_v11 = vpop.f32.mrb[1].mxu1 }
 0x259   :  { %v314_v12 = vadd.f32 %v313_v11, %v217_v3 }
 0x25a   :  { %v333_v14 = vmax.f32 %v319_v10, 0.0 }
 0x25b   :  { %v332_v15 = vmax.f32 %v314_v12, 0.0  ;;  %v454_v16 = vpop.f32.mrb[2].mxu1 }
 0x25c   :  { %v361_v17 = vmul.f32 %v348_v8, %v333_v14  ;;  %v329_v18 = vadd.f32 %v454_v16, %v232_v6  ;;  %v323_v19 = vpop.f32.mrb[3].mxu1 }
 0x25d   :  { %v360_v20 = vmul.f32 %v343_v7, %v332_v15  ;;  %v324_v21 = vadd.f32 %v323_v19, %v227_v5 }
 0x25e   :  { %v366_v22 = vsel %vm364_vm6, %v361_v17, 0.0  ;;  %v335_v23 = vmax.f32 %v329_v18, 0.0 }
 0x25f   :  { %v365_v24 = vsel %vm364_vm6, %v360_v20, 0.0  ;;  %v334_v25 = vmax.f32 %v324_v21, 0.0 }
 0x260   :  { %v367_v27 = vadd.f32 %v366_v22, %v365_v24  ;;  %v363_v28 = vmul.f32 %v358_v26, %v335_v23 }
 0x261   :  { %v362_v29 = vmul.f32 %v353_v13, %v334_v25 }
 0x262   :  { %v370_v32 = vsel %vm364_vm6, %v363_v28, 0.0 }
 0x263   :  { %v368_v30 = vsel %vm364_vm6, %v362_v29, 0.0 }
 0x264   :  { %v369_v31 = vadd.f32 %v368_v30, %v367_v27 }
 0x266   :  { %v371_v34 = vadd.f32 %v370_v32, %v369_v31 }
 0x268   :  { %v372_v35 = vrot.slane %v371_v34, 4 }
 0x26a   :  { %v373_v37 = vadd.f32 %v372_v35, %v371_v34 }
 0x26c   :  { %v374_v38 = vrot.slane %v373_v37, 2 }
 0x26e   :  { %v375_v40 = vadd.f32 %v374_v38, %v373_v37 }
 0x270   :  { %v376_v42 = vrot.slane %v375_v40, 1 }
 0x272   :  { %v377_v44 = vadd.f32 %v376_v42, %v375_v40 }
 0x274   :  { %v388_v45 = vadd.f32 %v387_v43, %v377_v44 }
 0x276   :  { %390 = vst.msk [vmem:[#allocation3] sm:$0x1] %vm389_vm7, %v388_v45 }
 0x277   :  { %494 = shalt.err (!%p491_p4)
}
 0x278   :  { %s495_s22 = scalar_lea.hbm %s652_s7, 16 }
 0x279   :  { %p496_p5 = scmp.ne.s32.totalorder %s652_s7, %s495_s22  ;;  %p499_p6 = scmp.lt.u32.totalorder %s495_s22, %s652_s7 }
 0x27b   :  { %p501_p7 = pnand %p499_p6, %p496_p5 }
 0x27d   :  { %504 = shalt.err (!%p501_p7)
}
 0x27e   :  { %400 = dma.vmem_to_hbm [thread:$0]  %s398_s17, 16, %s652_s7, [#allocation4]  }
 0x27f   :  { %505 = dma.done.wait [#allocation4], 16  }
 0x280   :  { %506 = vsyncadd [#allocation4], 4294967280 }
 0x281   :  { %404 = vsyncpa [#allocation4], 1 }

</bundles_post_ra>
